<compile_context>
chip_gen: v5e
topology: v5e:2x2
jax: 0.10.0
libtpu: 0.0.40
codegen_flags: <defaults>
</compile_context>

<pallas_src>
import math
import functools

import jax
import jax.numpy as jnp
from jax import lax
from jax.experimental import pallas as pl
from jax.experimental.pallas import tpu as pltpu


def _uniform_u32(shape, seed_u32):
    """Counter-based per-element uniform uint32 bits (murmur3 fmix32 mixer).

    Pure jnp integer ops only, so it works under Mosaic and CPU interpret.
    """
    b_i = lax.broadcasted_iota(jnp.uint32, shape, 0)
    m_i = lax.broadcasted_iota(jnp.uint32, shape, 1)
    n_i = lax.broadcasted_iota(jnp.uint32, shape, 2)
    x = (b_i * jnp.uint32(shape[1] * shape[2])
         + m_i * jnp.uint32(shape[2])
         + n_i)
    x = x + seed_u32 * jnp.uint32(0x9E3779B9)
    x = x ^ (x >> 16)
    x = x * jnp.uint32(0x85EBCA6B)
    x = x ^ (x >> 13)
    x = x * jnp.uint32(0xC2B2AE35)
    x = x ^ (x >> 16)
    return x


def _sdpa_dropout_kernel(seed_ref, x1_ref, x2_ref, x3_ref, o_ref, *, p, scale):
    x1 = x1_ref[...]   # (B, M, K) f32
    x2 = x2_ref[...]   # (B, N, K) f32
    x3 = x3_ref[...]   # (B, N, D) f32

    # qk[b] = x1[b] @ x2[b]^T  -- batched contraction over K, no explicit .T
    qk = jnp.einsum("bmk,bnk->bmn", x1, x2,
                    preferred_element_type=jnp.float32)        # (B, M, N)
    scaled = qk * jnp.float32(scale)

    # numerically-stable softmax along the last dim
    m = jnp.max(scaled, axis=-1, keepdims=True)
    e = jnp.exp(scaled - m)
    denom = jnp.sum(e, axis=-1, keepdims=True)                 # (B, M, 1)

    # dropout(p): integer-threshold compare on raw uniform bits.
    # softmax normalization and 1/(1-p) rescale folded into one scale.
    seed_u32 = seed_ref[0].astype(jnp.uint32)
    bits = _uniform_u32(scaled.shape, seed_u32)
    threshold = jnp.uint32(min(int(p * 4294967296.0), 4294967295))
    keep = bits >= threshold                                   # P(keep) = 1-p
    comb_scale = jnp.float32(1.0 / (1.0 - p)) / denom          # (B, M, 1)
    dropped = jnp.where(keep, e * comb_scale, jnp.float32(0.0))

    # output[b] = dropped[b] @ x3[b]
    out = jnp.einsum("bmn,bnd->bmd", dropped, x3,
                     preferred_element_type=jnp.float32)       # (B, M, D)
    o_ref[...] = out.astype(o_ref.dtype)


def sdpa_dropout(x1, x2, x3, seed, p=0.2):
    B, M, K = x1.shape
    Bk, N, Kk = x2.shape
    Bv, Nv, D = x3.shape
    assert B == Bk == Bv and K == Kk and N == Nv

    kernel = functools.partial(
        _sdpa_dropout_kernel,
        p=float(p),
        scale=1.0 / math.sqrt(8.0),  # hard-coded 8, matching the PyTorch model
    )

    # Whole problem (~2 KiB) fits trivially in VMEM -> single invocation,
    # no grid, whole-array blocks.
    # TODO(synk): output last dim is 4 (<128) so the final store is masked; a
    # lane-dense (1,128) output would need an in-kernel reshape that risks
    # Mosaic relayout failures at this tiny size, so it is intentionally kept
    # simple.
    return pl.pallas_call(
        kernel,
        out_shape=jax.ShapeDtypeStruct((B, M, D), jnp.float32),
        in_specs=[
            pl.BlockSpec(memory_space=pltpu.MemorySpace.SMEM),   # seed scalar
            pl.BlockSpec(memory_space=pltpu.MemorySpace.VMEM),
            pl.BlockSpec(memory_space=pltpu.MemorySpace.VMEM),
            pl.BlockSpec(memory_space=pltpu.MemorySpace.VMEM),
        ],
        out_specs=pl.BlockSpec(memory_space=pltpu.MemorySpace.VMEM),
    )(seed, x1, x2, x3)


if __name__ == "__main__":
    key = jax.random.PRNGKey(0)
    k1, k2, k3 = jax.random.split(key, 3)

    # Consistent shapes preserving the module's forward semantics.
    B, M, K, N, D = 8, 4, 10, 7, 4
    x1 = jax.random.normal(k1, (B, M, K), dtype=jnp.float32)
    x2 = jax.random.normal(k2, (B, N, K), dtype=jnp.float32)
    x3 = jax.random.normal(k3, (B, N, D), dtype=jnp.float32)
    seed = jnp.array([0], dtype=jnp.int32)

    out = sdpa_dropout(x1, x2, x3, seed, p=0.2)
    jax.block_until_ready(out)
    assert out.shape == (B, M, D), out.shape
    assert bool(jnp.all(jnp.isfinite(out)))

    # Sanity check: with p = 0 the kernel must equal plain softmax attention.
    out_p0 = sdpa_dropout(x1, x2, x3, seed, p=0.0)
    qk_ref = jnp.einsum("bmk,bnk->bmn", x1, x2) * (1.0 / math.sqrt(8.0))
    ref = jnp.einsum("bmn,bnd->bmd", jax.nn.softmax(qk_ref, axis=-1), x3)
    assert jnp.allclose(out_p0, ref, atol=1e-5, rtol=1e-5)

    print("KERNEL_OK")
</pallas_src>

<mosaic_0001>
module attributes {stable_mosaic.version = 11 : i64} {
  func.func @_sdpa_dropout_kernel(%arg0: memref<1xi32, #tpu.memory_space<smem>>, %arg1: memref<8x4x10xf32, #tpu.memory_space<vmem>>, %arg2: memref<8x7x10xf32, #tpu.memory_space<vmem>>, %arg3: memref<8x7x4xf32, #tpu.memory_space<vmem>>, %arg4: memref<8x4x4xf32, #tpu.memory_space<vmem>>) attributes {dimension_semantics = [], scalar_prefetch = 0 : i64, scratch_operands = 0 : i64, tpu.core_type = #tpu.core_type<tc>} {
    %c0 = arith.constant 0 : index
    %c0_0 = arith.constant 0 : index
    %c0_1 = arith.constant 0 : index
    %0 = vector.load %arg1[%c0, %c0_0, %c0_1] : memref<8x4x10xf32, #tpu.memory_space<vmem>>, vector<8x4x10xf32>
    %c0_2 = arith.constant 0 : index
    %c0_3 = arith.constant 0 : index
    %c0_4 = arith.constant 0 : index
    %1 = vector.load %arg2[%c0_2, %c0_3, %c0_4] : memref<8x7x10xf32, #tpu.memory_space<vmem>>, vector<8x7x10xf32>
    %c0_5 = arith.constant 0 : index
    %c0_6 = arith.constant 0 : index
    %c0_7 = arith.constant 0 : index
    %2 = vector.load %arg3[%c0_5, %c0_6, %c0_7] : memref<8x7x4xf32, #tpu.memory_space<vmem>>, vector<8x7x4xf32>
    "tpu.trace_start"() <{level = 10 : i32, message = "bmk,bnk->bmn"}> : () -> ()
    %cst = arith.constant dense<0.000000e+00> : vector<8x4x7xf32>
    %3 = tpu.matmul %0, %1, %cst {dimension_numbers = #tpu.dot_dimension_numbers<[2], [2], [1], [1], [0, 0, 0, 1, 1, 1], [0], [0]>} : vector<8x4x10xf32>, vector<8x7x10xf32>, vector<8x4x7xf32> -> vector<8x4x7xf32>
    "tpu.trace_stop"() : () -> ()
    %cst_8 = arith.constant 0.353553385 : f32
    %4 = vector.broadcast %cst_8 : f32 to vector<8x4x7xf32>
    %5 = arith.mulf %3, %4 : vector<8x4x7xf32>
    %cst_9 = arith.constant dense<0xFF800000> : vector<8x4xf32>
    %6 = vector.multi_reduction <maximumf>, %5, %cst_9 [2] : vector<8x4x7xf32> to vector<8x4xf32>
    %7 = vector.shape_cast %6 : vector<8x4xf32> to vector<8x4x1xf32>
    %8 = vector.broadcast %7 : vector<8x4x1xf32> to vector<8x4x7xf32>
    %9 = arith.subf %5, %8 : vector<8x4x7xf32>
    %10 = math.exp %9 : vector<8x4x7xf32>
    %cst_10 = arith.constant dense<0.000000e+00> : vector<8x4xf32>
    %11 = vector.multi_reduction <add>, %10, %cst_10 [2] : vector<8x4x7xf32> to vector<8x4xf32>
    %12 = vector.shape_cast %11 : vector<8x4xf32> to vector<8x4x1xf32>
    %c0_11 = arith.constant 0 : index
    %13 = memref.load %arg0[%c0_11] : memref<1xi32, #tpu.memory_space<smem>>
    %14 = tpu.iota {dimensions = array<i32: 0>} : vector<8x4x7xi32>
    %15 = tpu.iota {dimensions = array<i32: 1>} : vector<8x4x7xi32>
    %16 = tpu.iota {dimensions = array<i32: 2>} : vector<8x4x7xi32>
    %c28_i32 = arith.constant 28 : i32
    %17 = vector.broadcast %c28_i32 : i32 to vector<8x4x7xi32>
    %18 = arith.muli %14, %17 : vector<8x4x7xi32>
    %c7_i32 = arith.constant 7 : i32
    %19 = vector.broadcast %c7_i32 : i32 to vector<8x4x7xi32>
    %20 = arith.muli %15, %19 : vector<8x4x7xi32>
    %21 = arith.addi %18, %20 : vector<8x4x7xi32>
    %22 = arith.addi %21, %16 : vector<8x4x7xi32>
    %c-1640531527_i32 = arith.constant -1640531527 : i32
    %23 = arith.muli %13, %c-1640531527_i32 : i32
    %24 = vector.broadcast %23 : i32 to vector<8x4x7xi32>
    %25 = arith.addi %22, %24 : vector<8x4x7xi32>
    %c16_i32 = arith.constant 16 : i32
    %26 = vector.broadcast %c16_i32 : i32 to vector<8x4x7xi32>
    %27 = arith.shrui %25, %26 : vector<8x4x7xi32>
    %28 = arith.xori %25, %27 : vector<8x4x7xi32>
    %c-2048144789_i32 = arith.constant -2048144789 : i32
    %29 = vector.broadcast %c-2048144789_i32 : i32 to vector<8x4x7xi32>
    %30 = arith.muli %28, %29 : vector<8x4x7xi32>
    %c13_i32 = arith.constant 13 : i32
    %31 = vector.broadcast %c13_i32 : i32 to vector<8x4x7xi32>
    %32 = arith.shrui %30, %31 : vector<8x4x7xi32>
    %33 = arith.xori %30, %32 : vector<8x4x7xi32>
    %c-1028477387_i32 = arith.constant -1028477387 : i32
    %34 = vector.broadcast %c-1028477387_i32 : i32 to vector<8x4x7xi32>
    %35 = arith.muli %33, %34 : vector<8x4x7xi32>
    %c16_i32_12 = arith.constant 16 : i32
    %36 = vector.broadcast %c16_i32_12 : i32 to vector<8x4x7xi32>
    %37 = arith.shrui %35, %36 : vector<8x4x7xi32>
    %38 = arith.xori %35, %37 : vector<8x4x7xi32>
    %c858993459_i32 = arith.constant 858993459 : i32
    %39 = vector.broadcast %c858993459_i32 : i32 to vector<8x4x7xi32>
    %40 = arith.cmpi uge, %38, %39 : vector<8x4x7xi32>
    %cst_13 = arith.constant 1.250000e+00 : f32
    %41 = vector.broadcast %cst_13 : f32 to vector<8x4x1xf32>
    %42 = arith.divf %41, %12 : vector<8x4x1xf32>
    %43 = vector.broadcast %42 : vector<8x4x1xf32> to vector<8x4x7xf32>
    %44 = arith.mulf %10, %43 : vector<8x4x7xf32>
    %cst_14 = arith.constant 0.000000e+00 : f32
    %45 = vector.broadcast %cst_14 : f32 to vector<8x4x7xf32>
    %46 = arith.select %40, %44, %45 : vector<8x4x7xi1>, vector<8x4x7xf32>
    "tpu.trace_start"() <{level = 10 : i32, message = "bmn,bnd->bmd"}> : () -> ()
    %cst_15 = arith.constant dense<0.000000e+00> : vector<8x4x4xf32>
    %47 = tpu.matmul %46, %2, %cst_15 {dimension_numbers = #tpu.dot_dimension_numbers<[2], [1], [1], [2], [0, 0, 0, 1, 1, 2], [0], [0]>} : vector<8x4x7xf32>, vector<8x7x4xf32>, vector<8x4x4xf32> -> vector<8x4x4xf32>
    "tpu.trace_stop"() : () -> ()
    %c0_16 = arith.constant 0 : index
    %c0_17 = arith.constant 0 : index
    %c0_18 = arith.constant 0 : index
    %48 = vector.load %arg4[%c0_16, %c0_17, %c0_18] : memref<8x4x4xf32, #tpu.memory_space<vmem>>, vector<8x4x4xf32>
    tpu.vector_store %arg4[%c0_16, %c0_17, %c0_18], %47 {strides = array<i32>} : memref<8x4x4xf32, #tpu.memory_space<vmem>>, vector<8x4x4xf32>,
    return
  }
}

</mosaic_0001>

<bundles_post_ra>
// kernel: tpu_custom_call.1
= control target key start
LH: loop header
LB: loop body
LE: loop exit
PB: predicated region body
PF: predicated region fallthrough
CT: control target
= control target key end

     0   :  { %vm42_vm0 = vcmask 80896   ;;  %vm259_vm1 = vcmask 52224   ;;  %vm591_vm2 = vcmask 1046528   ;;  %vm587_vm9 = vcmask 56320   ;;  %s1354_s2 = inlined_call_operand.vmem [shape: f32[8,7,10], index: 2, kind: input, shape index: {}]   ;;  %s1355_s1 = inlined_call_operand.vmem [shape: f32[8,4,10], index: 1, kind: input, shape index: {}]   ;;  %s1356_s0 = inlined_call_operand.<no memory space> [shape: s32[1], index: 0, kind: input, shape index: {}]   ;;  %s1357_s3 = inlined_call_operand.vmem [shape: f32[8,7,4], index: 3, kind: input, shape index: {}]   ;;  %s1358_s4 = inlined_call_operand.vmem [shape: f32[8,4,4], index: 4, kind: output, shape index: {}]  }
   0x1   :  { %v26_v0 = vld [vmem:[%s1354_s2] sm:$0x7f]  ;;  %v28_v1 = vld [vmem:[%s1354_s2 + $0x10] sm:$0x7f]  ;;  %v20_v3 = vld [vmem:[%s1355_s1 + $0x8] sm:$0xf] }
   0x2   :  { %v18_v2 = vld [vmem:[%s1355_s1] sm:$0xf]  ;;  %810 = vmatpush.xpose.msk.msra.mxu0 %vm42_vm0, %v26_v0  ;;  %814 = vmatpush.xpose.msk.msra.mxu2 %vm42_vm0, %v28_v1  ;;  %v32_v4 = vld [vmem:[%s1354_s2 + $0x30] sm:$0x7f]  ;;  %v27_v5 = vld [vmem:[%s1354_s2 + $0x8] sm:$0x7f] }
   0x3   :  { %812 = vmatpush.xpose.msk.msra.mxu1 %vm42_vm0, %v27_v5  ;;  %v29_v6 = vld [vmem:[%s1354_s2 + $0x18] sm:$0x7f]  ;;  %v19_v7 = vld [vmem:[%s1355_s1 + $0x4] sm:$0xf]  ;;  %v21_v8 = vld [vmem:[%s1355_s1 + $0xc] sm:$0xf] }
   0x4   :  { %816 = vmatpush.xpose.msk.msra.mxu3 %vm42_vm0, %v29_v6  ;;  %v33_v9 = vld [vmem:[%s1354_s2 + $0x38] sm:$0x7f]  ;;  %v31_v10 = vld [vmem:[%s1354_s2 + $0x28] sm:$0x7f]  ;;  %v30_v11 = vld [vmem:[%s1354_s2 + $0x20] sm:$0x7f] }
   0x5   :  { %811 = vmatmul.msk.f32.vlgmr.msra.gmra.mxu0 %vm42_vm0, %v18_v2  ;;  %815 = vmatmul.msk.f32.vlgmr.msra.gmra.mxu2 %vm42_vm0, %v20_v3  ;;  %v24_v12 = vld [vmem:[%s1355_s1 + $0x18] sm:$0xf]  ;;  %v22_v13 = vld [vmem:[%s1355_s1 + $0x10] sm:$0xf]  ;;  %v23_v14 = vld [vmem:[%s1355_s1 + $0x14] sm:$0xf] }
   0x6   :  { %822 = vmatpush.xpose.msk.msrb.mxu2 %vm42_vm0, %v32_v4  ;;  %813 = vmatmul.msk.f32.vlgmr.msra.gmra.mxu1 %vm42_vm0, %v19_v7  ;;  %v25_v15 = vld [vmem:[%s1355_s1 + $0x1c] sm:$0xf]  ;;  %s353_s21 = smul.u32 2654435769, %s1356_s0 }
   0x7   :  { %817 = vmatmul.msk.f32.vlgmr.msra.gmra.mxu3 %vm42_vm0, %v21_v8  ;;  %820 = vmatpush.xpose.msk.msrb.mxu1 %vm42_vm0, %v31_v10 }
   0x8   :  { %824 = vmatpush.xpose.msk.msrb.mxu3 %vm42_vm0, %v33_v9  ;;  %818 = vmatpush.xpose.msk.msrb.mxu0 %vm42_vm0, %v30_v11 }
   0xd   :  { %823 = vmatmul.msk.f32.vlgmr.msrb.gmra.mxu2 %vm42_vm0, %v24_v12  ;;  %819 = vmatmul.msk.f32.vlgmr.msrb.gmra.mxu0 %vm42_vm0, %v22_v13 }
   0xe   :  { %821 = vmatmul.msk.f32.vlgmr.msrb.gmra.mxu1 %vm42_vm0, %v23_v14 }
   0xf   :  { %825 = vmatmul.msk.f32.vlgmr.msrb.gmra.mxu3 %vm42_vm0, %v25_v15 }
  0x82   :  { %v66_v16 = vpop.f32.mrf.mxu0 }
  0x83   :  { %v251_v17 = vmul.f32 0.35355338, %v66_v16  ;;  %v92_v18 = vpop.f32.mrf.mxu1  ;;  %v333_v16 = vlaneseq }
  0x84   :  { %v252_v20 = vmul.f32 0.35355338, %v92_v18 }
  0x85   :  { %v260_v19 = vsel %vm259_vm1, %v251_v17, -inf  ;;  %v1014_v18 = vand.u32 127, %v333_v16 }
  0x86   :  { %261 = vmax.xlane.f32.xlu1 %v260_v19  ;;  %v263_v25 = vsel %vm259_vm1, %v252_v20, -inf }
  0x88   :  { %v118_v21 = vpop.f32.mrf.mxu2 }
  0x89   :  { %v253_v22 = vmul.f32 0.35355338, %v118_v21  ;;  %v1017_v21 = vstv %s353_s21 }
  0x8a   :  { %v144_v23 = vpop.f32.mrf.mxu3  ;;  %v170_v32 = vpop.f32.mrf.mxu0 }
  0x8b   :  { %v266_v24 = vsel %vm259_vm1, %v253_v22, -inf  ;;  %v196_v26 = vpop.f32.mrf.mxu1  ;;  %v254_v27 = vmul.f32 0.35355338, %v144_v23  ;;  %v255_v36 = vmul.f32 0.35355338, %v170_v32 }
  0x8c   :  { %267 = vmax.xlane.f32.xlu0 %v266_v24  ;;  %v256_v28 = vmul.f32 0.35355338, %v196_v26 }
  0x8d   :  { %v269_v31 = vsel %vm259_vm1, %v254_v27, -inf  ;;  %v272_v39 = vsel %vm259_vm1, %v255_v36, -inf }
  0x8e   :  { %264 = vmax.xlane.f32.xlu1 %v263_v25  ;;  %v275_v35 = vsel %vm259_vm1, %v256_v28, -inf }
  0x90   :  { %v222_v29 = vpop.f32.mrf.mxu2 }
  0x91   :  { %v257_v30 = vmul.f32 0.35355338, %v222_v29 }
  0x92   :  { %v248_v33 = vpop.f32.mrf.mxu3 }
  0x93   :  { %v278_v34 = vsel %vm259_vm1, %v257_v30, -inf  ;;  %v258_v37 = vmul.f32 0.35355338, %v248_v33 }
  0x94   :  { %270 = vmax.xlane.f32.xlu0 %v269_v31  ;;  %279 = vmax.xlane.f32.xlu2 %v278_v34 }
  0x95   :  { %v281_v38 = vsel %vm259_vm1, %v258_v37, -inf }
  0x96   :  { %276 = vmax.xlane.f32.xlu1 %v275_v35 }
  0x9c   :  { %282 = vmax.xlane.f32.xlu2 %v281_v38  ;;  %273 = vmax.xlane.f32.xlu0 %v272_v39  ;;  %v34_v38 = vld [vmem:[%s1357_s3] sm:$0x7f] }
  0x9d   :  { %834 = vmatpush.msk.msra.mxu0 %vm591_vm2, %v34_v38  ;;  %v37_v38 = vld [vmem:[%s1357_s3 + $0x18] sm:$0x7f] }
  0x9e   :  { %840 = vmatpush.msk.msra.mxu3 %vm591_vm2, %v37_v38 }
  0xf9   :  { %v262_v40 = vpop.xlane.xlu1 %261 }
  0xfa   :  { %v284_v41 = vsub.f32 %v251_v17, %v262_v40  ;;  %v334_v17 = vshrl.u32 %v333_v16, 7 }
  0xfc   :  { %v292_v42 = vmul.f32 1.442695, %v284_v41  ;;  %v337_v19 = vmul.u32 7, %v334_v17 }
  0xfe   :  { %850 = vpow2.f32 %v292_v42  ;;  %v339_v24 = vadd.s32 56, %v337_v19  ;;  %v338_v32 = vadd.s32 28, %v337_v19  ;;  %v340_v33 = vadd.s32 84, %v337_v19 }
  0xff   :  { %v268_v43 = vpop.xlane.xlu0 %267  ;;  %v342_v16 = vadd.s32 140, %v337_v19 }
 0x100   :  { %v286_v44 = vsub.f32 %v253_v22, %v268_v43  ;;  %v347_v25 = vadd.s32 %v339_v24, %v1014_v18 }
 0x101   :  { %v265_v45 = vpop.xlane.xlu1 %264 }
 0x102   :  { %v296_v46 = vmul.f32 1.442695, %v286_v44  ;;  %v285_v47 = vsub.f32 %v252_v20, %v265_v45  ;;  %v345_v20 = vadd.s32 %v337_v19, %v1014_v18 }
 0x104   :  { %v979_v48 = vpop.eup %850  ;;  %852 = vpow2.f32 %v296_v46  ;;  %v294_v50 = vmul.f32 1.442695, %v285_v47  ;;  %v355_v22 = vadd.s32 %v1017_v21, %v345_v20  ;;  %v341_v46 = vadd.s32 112, %v337_v19 }
 0x105   :  { %v308_v49 = vsel %vm259_vm1, %v979_v48, 0.0 }
 0x106   :  { %309 = vadd.xlane.f32.xlu1 %v308_v49  ;;  %854 = vpow2.f32 %v294_v50  ;;  %v363_v23 = vshrl.u32 %v355_v22, 16  ;;  %v343_v49 = vadd.s32 168, %v337_v19  ;;  %v344_v50 = vadd.s32 196, %v337_v19 }
 0x107   :  { %v271_v51 = vpop.xlane.xlu0 %270  ;;  %v280_v52 = vpop.xlane.xlu2 %279 }
 0x108   :  { %v287_v53 = vsub.f32 %v254_v27, %v271_v51  ;;  %v290_v56 = vsub.f32 %v257_v30, %v280_v52  ;;  %v371_v26 = vxor.u32 %v363_v23, %v355_v22  ;;  %v357_v27 = vadd.s32 %v1017_v21, %v347_v25 }
 0x109   :  { %v277_v59 = vpop.xlane.xlu1 %276 }
 0x10a   :  { %v983_v54 = vpop.eup %852  ;;  %v298_v55 = vmul.f32 1.442695, %v287_v53  ;;  %v304_v58 = vmul.f32 1.442695, %v290_v56  ;;  %v289_v2 = vsub.f32 %v256_v28, %v277_v59  ;;  %v365_v28 = vshrl.u32 %v357_v27, 16 }
 0x10b   :  { %v314_v57 = vsel %vm259_vm1, %v983_v54, 0.0  ;;  %v379_v29 = vmul.u32 2246822507, %v371_v26 }
 0x10c   :  { %856 = vpow2.f32 %v298_v55  ;;  %315 = vadd.xlane.f32.xlu2 %v314_v57  ;;  %v987_v62 = vpop.eup %854  ;;  %v302_v7 = vmul.f32 1.442695, %v289_v2  ;;  %v373_v30 = vxor.u32 %v365_v28, %v357_v27  ;;  %v349_v55 = vadd.s32 %v341_v46, %v1014_v18 }
 0x10d   :  { %858 = vpow2.f32 %v304_v58  ;;  %v311_v5 = vsel %vm259_vm1, %v987_v62, 0.0  ;;  %v387_v34 = vshrl.u32 %v379_v29, 13  ;;  %v351_v57 = vadd.s32 %v343_v49, %v1014_v18 }
 0x10e   :  { %v381_v31 = vmul.u32 2246822507, %v373_v30  ;;  %v352_v58 = vadd.s32 %v344_v50, %v1014_v18  ;;  %v350_v30 = vadd.s32 %v342_v16, %v1014_v18 }
 0x10f   :  { %v283_v60 = vpop.xlane.xlu2 %282  ;;  %v274_v61 = vpop.xlane.xlu0 %273  ;;  %v395_v41 = vxor.u32 %v387_v34, %v379_v29 }
 0x110   :  { %v291_v63 = vsub.f32 %v258_v37, %v283_v60  ;;  %v288_v0 = vsub.f32 %v255_v36, %v274_v61  ;;  %v389_v35 = vshrl.u32 %v381_v31, 13  ;;  %v346_v36 = vadd.s32 %v338_v32, %v1014_v18 }
 0x111   :  { %v348_v37 = vadd.s32 %v340_v33, %v1014_v18  ;;  %v403_v51 = vmul.u32 3266489909, %v395_v41  ;;  %v359_v60 = vadd.s32 %v1017_v21, %v349_v55  ;;  %v362_v2 = vadd.s32 %v1017_v21, %v352_v58 }
 0x112   :  { %v989_v1 = vpop.eup %856  ;;  %v306_v3 = vmul.f32 1.442695, %v291_v63  ;;  %v300_v4 = vmul.f32 1.442695, %v288_v0  ;;  %v356_v39 = vadd.s32 %v1017_v21, %v346_v36  ;;  %v397_v42 = vxor.u32 %v389_v35, %v381_v31 }
 0x113   :  { %v317_v6 = vsel %vm259_vm1, %v989_v1, 0.0  ;;  %v995_v8 = vpop.eup %858  ;;  %v358_v40 = vadd.s32 %v1017_v21, %v348_v37  ;;  %v361_v0 = vadd.s32 %v1017_v21, %v351_v57  ;;  %v360_v41 = vadd.s32 %v1017_v21, %v350_v30 }
 0x114   :  { %860 = vpow2.f32 %v306_v3  ;;  %312 = vadd.xlane.f32.xlu2 %v311_v5  ;;  %318 = vadd.xlane.f32.xlu0 %v317_v6  ;;  %v326_v12 = vsel %vm259_vm1, %v995_v8, 0.0  ;;  %v364_v43 = vshrl.u32 %v356_v39, 16  ;;  %v405_v52 = vmul.u32 3266489909, %v397_v42 }
 0x115   :  { %862 = vpow2.f32 %v300_v4  ;;  %v366_v44 = vshrl.u32 %v358_v40, 16  ;;  %v411_v3 = vshrl.u32 %v403_v51, 16  ;;  %v36_v4 = vld [vmem:[%s1357_s3 + $0x10] sm:$0x7f] }
 0x116   :  { %864 = vpow2.f32 %v302_v7  ;;  %v372_v45 = vxor.u32 %v364_v43, %v356_v39  ;;  %v413_v5 = vshrl.u32 %v405_v52, 16  ;;  %838 = vmatpush.msk.msra.mxu2 %vm591_vm2, %v36_v4  ;;  %v35_v39 = vld [vmem:[%s1357_s3 + $0x8] sm:$0x7f] }
 0x117   :  { %v374_v47 = vxor.u32 %v366_v44, %v358_v40  ;;  %v419_v17 = vxor.u32 %v411_v3, %v403_v51  ;;  %836 = vmatpush.msk.msra.mxu1 %vm591_vm2, %v35_v39 }
 0x118   :  { %v380_v53 = vmul.u32 2246822507, %v372_v45  ;;  %v1043_v20 = vxor.u32 %v413_v5, %v405_v52  ;;  %v40_v5 = vld [vmem:[%s1357_s3 + $0x30] sm:$0x7f] }
 0x119   :  { %v382_v56 = vmul.u32 2246822507, %v374_v47  ;;  %v826_v19 = vxor.u32 2147483648, %v419_v17  ;;  %846 = vmatpush.msk.msrb.mxu2 %vm591_vm2, %v40_v5 }
 0x11a   :  { %v997_v9 = vpop.eup %860  ;;  %v388_v59 = vshrl.u32 %v380_v53, 13  ;;  %v828_v32 = vxor.u32 2147483648, %v1043_v20 }
 0x11b   :  { %v999_v10 = vpop.eup %862  ;;  %v329_v11 = vsel %vm259_vm1, %v997_v9, 0.0  ;;  %v390_v63 = vshrl.u32 %v382_v56, 13  ;;  %vm1092_vm7 = vcmp.ge.s32.totalorder %v826_v19, 3006477107 }
 0x11c   :  { %330 = vadd.xlane.f32.xlu1 %v329_v11  ;;  %327 = vadd.xlane.f32.xlu0 %v326_v12  ;;  %v320_v13 = vsel %vm259_vm1, %v999_v10, 0.0  ;;  %v1007_v14 = vpop.eup %864  ;;  %v396_v6 = vxor.u32 %v388_v59, %v380_v53  ;;  %v367_v11 = vshrl.u32 %v359_v60, 16  ;;  %v369_v12 = vshrl.u32 %v361_v0, 16 }
 0x11d   :  { %321 = vadd.xlane.f32.xlu2 %v320_v13  ;;  %v323_v15 = vsel %vm259_vm1, %v1007_v14, 0.0  ;;  %v398_v7 = vxor.u32 %v390_v63, %v382_v56  ;;  %v370_v13 = vshrl.u32 %v362_v2, 16  ;;  %vm1175_vm0 = vcmp.ge.s32.totalorder %v828_v32, 3006477107 }
 0x11e   :  { %v404_v23 = vmul.u32 3266489909, %v396_v6  ;;  %v377_v26 = vxor.u32 %v369_v12, %v361_v0  ;;  %v41_v6 = vld [vmem:[%s1357_s3 + $0x38] sm:$0x7f] }
 0x11f   :  { %v406_v24 = vmul.u32 3266489909, %v398_v7  ;;  %v378_v28 = vxor.u32 %v370_v13, %v362_v2  ;;  %v38_v7 = vld [vmem:[%s1357_s3 + $0x20] sm:$0x7f]  ;;  %848 = vmatpush.msk.msrb.mxu3 %vm591_vm2, %v41_v6  ;;  %v39_v13 = vld [vmem:[%s1357_s3 + $0x28] sm:$0x7f] }
 0x120   :  { %v412_v35 = vshrl.u32 %v404_v23, 16  ;;  %v385_v37 = vmul.u32 2246822507, %v377_v26  ;;  %842 = vmatpush.msk.msrb.mxu0 %vm591_vm2, %v38_v7  ;;  %844 = vmatpush.msk.msrb.mxu1 %vm591_vm2, %v39_v13 }
 0x121   :  { %v414_v36 = vshrl.u32 %v406_v24, 16  ;;  %v386_v40 = vmul.u32 2246822507, %v378_v28 }
 0x122   :  { %v1075_v21 = vxor.u32 %v412_v35, %v404_v23  ;;  %v393_v56 = vshrl.u32 %v385_v37, 13 }
 0x123   :  { %v1085_v55 = vxor.u32 %v414_v36, %v406_v24  ;;  %v394_v57 = vshrl.u32 %v386_v40, 13 }
 0x124   :  { %324 = vadd.xlane.f32.xlu0 %v323_v15  ;;  %v375_v15 = vxor.u32 %v367_v11, %v359_v60  ;;  %v368_v60 = vshrl.u32 %v360_v41, 16  ;;  %v827_v12 = vxor.u32 2147483648, %v1075_v21 }
 0x125   :  { %v1116_v16 = vxor.u32 %v394_v57, %v386_v40  ;;  %v829_v24 = vxor.u32 2147483648, %v1085_v55 }
 0x126   :  { %v383_v25 = vmul.u32 2246822507, %v375_v15  ;;  %v1114_v15 = vxor.u32 %v393_v56, %v385_v37 }
 0x127   :  { %v410_v40 = vmul.u32 3266489909, %v1116_v16 }
 0x128   :  { %v391_v33 = vshrl.u32 %v383_v25, 13  ;;  %v409_v39 = vmul.u32 3266489909, %v1114_v15 }
 0x12a   :  { %v1066_v46 = vxor.u32 %v391_v33, %v383_v25  ;;  %v1126_v25 = vxor.u32 %v368_v60, %v360_v41  ;;  %v417_v56 = vshrl.u32 %v409_v39, 16 }
 0x12c   :  { %v407_v2 = vmul.u32 3266489909, %v1066_v46 }
 0x179   :  { %v1034_v61 = vpop.xlane.xlu1 %309 }
 0x17a   :  { %866 = vrcp.f32 %v1034_v61  ;;  %v462_v31 = vand.u32 2147483648, %v1034_v61  ;;  %vm456_vm3 = vweird.f32 %v1034_v61  ;;  %v460_v43 = vand.u32 2147483647, %v1034_v61 }
 0x17c   :  { %v463_v44 = vor.u32 1.1754944e-38, %v462_v31  ;;  %vm461_vm6 = vcmp.eq.f32.partialorder %v460_v43, 8.507059e+37 }
 0x17f   :  { %v1045_v22 = vpop.xlane.xlu2 %315 }
 0x180   :  { %v867_v27 = vpop.eup %866  ;;  %868 = vrcp.f32 %v1045_v22  ;;  %v490_v45 = vand.u32 2147483647, %v1045_v22  ;;  %v492_v50 = vand.u32 2147483648, %v1045_v22  ;;  %vm486_vm8 = vweird.f32 %v1045_v22 }
 0x181   :  { %v452_v29 = vmul.f32 %v867_v27, %v1034_v61  ;;  %vm457_vm4 = vweird.f32 %v867_v27 }
 0x182   :  { %vm1080_vm5 = vmor %vm456_vm3, %vm457_vm4  ;;  %v493_v11 = vor.u32 1.1754944e-38, %v492_v50  ;;  %vm1119_vm11 = vcmp.eq.f32.partialorder %v490_v45, 8.507059e+37 }
 0x183   :  { %v453_v34 = vsub.f32 1.0, %v452_v29  ;;  %v415_v29 = vshrl.u32 %v407_v2, 16 }
 0x185   :  { %v454_v18 = vmul.f32 %v867_v27, %v453_v34 }
 0x186   :  { %v1062_v42 = vpop.eup %868 }
 0x187   :  { %v455_v47 = vadd.f32 %v867_v27, %v454_v18  ;;  %v482_v49 = vmul.f32 %v1062_v42, %v1045_v22  ;;  %v1071_v51 = vpop.xlane.xlu2 %312  ;;  %v1073_v52 = vpop.xlane.xlu0 %318  ;;  %vm487_vm10 = vweird.f32 %v1062_v42 }
 0x188   :  { %870 = vrcp.f32 %v1071_v51  ;;  %v477_v61 = vand.u32 2147483648, %v1071_v51  ;;  %v507_v63 = vand.u32 2147483648, %v1073_v52  ;;  %vm471_vm12 = vweird.f32 %v1071_v51  ;;  %vm1158_vm14 = vmor %vm486_vm8, %vm487_vm10 }
 0x189   :  { %v459_v58 = vsel %vm1080_vm5, %v867_v27, %v455_v47  ;;  %v483_v59 = vsub.f32 1.0, %v482_v49  ;;  %872 = vrcp.f32 %v1073_v52  ;;  %v475_v28 = vand.u32 2147483647, %v1071_v51 }
 0x18a   :  { %v464_v4 = vsel %vm461_vm6, %v463_v44, %v459_v58  ;;  %v1137_v19 = vor.u32 1.1754944e-38, %v477_v61  ;;  %v505_v33 = vand.u32 2147483647, %v1073_v52  ;;  %v1140_v34 = vor.u32 1.1754944e-38, %v507_v63 }
 0x18b   :  { %v484_v3 = vmul.f32 %v1062_v42, %v483_v59  ;;  %v465_v23 = vmul.f32 1.25, %v464_v4  ;;  %vm501_vm13 = vweird.f32 %v1073_v52  ;;  %v384_v44 = vmul.u32 2246822507, %v1126_v25 }
 0x18c   :  { %vm1168_vm15 = vcmp.eq.f32.partialorder %v475_v28, 8.507059e+37  ;;  %vm1187_vm2 = vcmp.eq.f32.partialorder %v505_v33, 8.507059e+37  ;;  %vm1203_vm6 = vcmp.ge.s32.totalorder %v827_v12, 3006477107 }
 0x18d   :  { %v485_v27 = vadd.f32 %v1062_v42, %v484_v3  ;;  %v571_v43 = vmul.f32 %v979_v48, %v465_v23  ;;  %v1179_v48 = vxor.u32 %v415_v29, %v407_v2  ;;  %v425_v23 = vxor.u32 %v417_v56, %v409_v39 }
 0x18e   :  { %v1128_v26 = vpop.eup %870  ;;  %v392_v16 = vshrl.u32 %v384_v44, 13 }
 0x18f   :  { %v1133_v30 = vpop.eup %872  ;;  %v467_v31 = vmul.f32 %v1128_v26, %v1071_v51  ;;  %v1142_v35 = vpop.xlane.xlu1 %330  ;;  %v489_v45 = vsel %vm1158_vm14, %v1062_v42, %v485_v27  ;;  %vm472_vm1 = vweird.f32 %v1128_v26  ;;  %v579_v58 = vsel %vm1092_vm7, %v571_v43, 0.0 }
 0x190   :  { %v1144_v36 = vpop.xlane.xlu0 %327  ;;  %v497_v37 = vmul.f32 %v1133_v30, %v1073_v52  ;;  %874 = vrcp.f32 %v1142_v35  ;;  %v1150_v38 = vpop.xlane.xlu2 %321  ;;  %v565_v47 = vand.u32 2147483647, %v1142_v35  ;;  %v567_v21 = vand.u32 2147483648, %v1142_v35  ;;  %835 = vmatmul.msk.f32.vlgmr.msra.gmra.mxu0 %vm587_vm9, %v579_v58  ;;  %vm1211_vm7 = vmor %vm471_vm12, %vm472_vm1 }
 0x191   :  { %v468_v41 = vsub.f32 1.0, %v467_v31  ;;  %876 = vrcp.f32 %v1150_v38  ;;  %v522_v42 = vand.u32 2147483648, %v1150_v38  ;;  %v520_v32 = vand.u32 2147483647, %v1150_v38 }
 0x192   :  { %v498_v22 = vsub.f32 1.0, %v497_v37  ;;  %878 = vrcp.f32 %v1144_v36  ;;  %vm502_vm3 = vweird.f32 %v1133_v30  ;;  %vm561_vm4 = vweird.f32 %v1142_v35 }
 0x193   :  { %v469_v50 = vmul.f32 %v1128_v26, %v468_v41  ;;  %vm516_vm5 = vweird.f32 %v1150_v38  ;;  %v550_v61 = vand.u32 2147483647, %v1144_v36  ;;  %v494_v63 = vsel %vm1119_vm11, %v493_v11, %v489_v45  ;;  %vm1237_vm12 = vmor %vm501_vm13, %vm502_vm3 }
 0x194   :  { %v499_v53 = vmul.f32 %v1133_v30, %v498_v22  ;;  %vm1216_vm8 = vcmp.eq.f32.partialorder %v565_v47, 8.507059e+37  ;;  %v568_v6 = vor.u32 1.1754944e-38, %v567_v21  ;;  %v523_v7 = vor.u32 1.1754944e-38, %v522_v42 }
 0x195   :  { %v470_v57 = vadd.f32 %v1128_v26, %v469_v50  ;;  %v552_v11 = vand.u32 2147483648, %v1144_v36  ;;  %vm1227_vm10 = vcmp.eq.f32.partialorder %v520_v32, 8.507059e+37  ;;  %vm546_vm11 = vweird.f32 %v1144_v36 }
 0x196   :  { %v875_v59 = vpop.eup %874  ;;  %v500_v60 = vadd.f32 %v1133_v30, %v499_v53  ;;  %v830_v17 = vxor.u32 2147483648, %v1179_v48  ;;  %v495_v29 = vmul.f32 1.25, %v494_v63  ;;  %vm1244_vm1 = vcmp.ge.s32.totalorder %v829_v24, 3006477107 }
 0x197   :  { %v877_v3 = vpop.eup %876  ;;  %v557_v4 = vmul.f32 %v875_v59, %v1142_v35  ;;  %v474_v51 = vsel %vm1211_vm7, %v1128_v26, %v470_v57  ;;  %vm562_vm14 = vweird.f32 %v875_v59  ;;  %vm1252_vm13 = vcmp.eq.f32.partialorder %v550_v61, 8.507059e+37 }
 0x198   :  { %v1221_v12 = vpop.xlane.xlu0 %324  ;;  %v512_v13 = vmul.f32 %v877_v3, %v1150_v38  ;;  %v879_v27 = vpop.eup %878  ;;  %v504_v33 = vsel %vm1237_vm12, %v1133_v30, %v500_v60  ;;  %vm517_vm3 = vweird.f32 %v877_v3  ;;  %v573_v41 = vmul.f32 %v983_v54, %v495_v29  ;;  %vm563_vm12 = vmor %vm561_vm4, %vm562_vm14 }
 0x199   :  { %v558_v26 = vsub.f32 1.0, %v557_v4  ;;  %880 = vrcp.f32 %v1221_v12  ;;  %v542_v37 = vmul.f32 %v879_v27, %v1144_v36  ;;  %v479_v55 = vsel %vm1168_vm15, %v1137_v19, %v474_v51  ;;  %vm518_vm15 = vmor %vm516_vm5, %vm517_vm3 }
 0x19a   :  { %v513_v52 = vsub.f32 1.0, %v512_v13  ;;  %v553_v45 = vor.u32 1.1754944e-38, %v552_v11  ;;  %v480_v22 = vmul.f32 1.25, %v479_v55  ;;  %vm547_vm7 = vweird.f32 %v879_v27 }
 0x19b   :  { %v559_v18 = vmul.f32 %v875_v59, %v558_v26  ;;  %v543_v43 = vsub.f32 1.0, %v542_v37  ;;  %v581_v47 = vsel %vm1175_vm0, %v573_v41, 0.0  ;;  %v509_v48 = vsel %vm1187_vm2, %v1140_v34, %v504_v33  ;;  %vm548_vm0 = vmor %vm546_vm11, %vm547_vm7 }
 0x19c   :  { %v514_v24 = vmul.f32 %v877_v3, %v513_v52  ;;  %839 = vmatmul.msk.f32.vlgmr.msra.gmra.mxu2 %vm587_vm9, %v581_v47  ;;  %v572_v19 = vmul.f32 %v987_v62, %v480_v22  ;;  %v510_v50 = vmul.f32 1.25, %v509_v48  ;;  %v535_v49 = vand.u32 2147483647, %v1221_v12 }
 0x19d   :  { %v560_v30 = vadd.f32 %v875_v59, %v559_v18  ;;  %v544_v46 = vmul.f32 %v879_v27, %v543_v43  ;;  %v537_v34 = vand.u32 2147483648, %v1221_v12  ;;  %v418_v35 = vshrl.u32 %v410_v40, 16 }
 0x19e   :  { %v515_v54 = vadd.f32 %v877_v3, %v514_v24  ;;  %v580_v38 = vsel %vm1203_vm6, %v572_v19, 0.0  ;;  %v832_v58 = vxor.u32 2147483648, %v425_v23  ;;  %v574_v63 = vmul.f32 %v989_v1, %v510_v50 }
 0x19f   :  { %v881_v21 = vpop.eup %880  ;;  %v564_v42 = vsel %vm563_vm12, %v875_v59, %v560_v30  ;;  %v545_v32 = vadd.f32 %v879_v27, %v544_v46  ;;  %837 = vmatmul.msk.f32.vlgmr.msra.gmra.mxu1 %vm587_vm9, %v580_v38  ;;  %vm1289_vm4 = vcmp.ge.s32.totalorder %v830_v17, 3006477107  ;;  %v426_v2 = vxor.u32 %v418_v35, %v410_v40 }
 0x1a0   :  { %v569_v53 = vsel %vm1216_vm8, %v568_v6, %v564_v42  ;;  %v519_v20 = vsel %vm518_vm15, %v877_v3, %v515_v54  ;;  %v527_v62 = vmul.f32 %v881_v21, %v1221_v12  ;;  %vm532_vm2 = vweird.f32 %v881_v21 }
 0x1a1   :  { %v570_v56 = vmul.f32 1.25, %v569_v53  ;;  %v524_v57 = vsel %vm1227_vm10, %v523_v7, %v519_v20  ;;  %v549_v60 = vsel %vm548_vm0, %v879_v27, %v545_v32  ;;  %v582_v4 = vsel %vm1244_vm1, %v574_v63, 0.0 }
 0x1a2   :  { %v525_v59 = vmul.f32 1.25, %v524_v57  ;;  %v528_v61 = vsub.f32 1.0, %v527_v62  ;;  %v554_v36 = vsel %vm1252_vm13, %v553_v45, %v549_v60  ;;  %vm531_vm5 = vweird.f32 %v1221_v12  ;;  %841 = vmatmul.msk.f32.vlgmr.msra.gmra.mxu3 %vm587_vm9, %v582_v4 }
 0x1a3   :  { %v555_v6 = vmul.f32 1.25, %v554_v36  ;;  %vm1302_vm6 = vcmp.ge.s32.totalorder %v832_v58, 3006477107  ;;  %v833_v7 = vxor.u32 2147483648, %v426_v2  ;;  %vm533_vm8 = vmor %vm531_vm5, %vm532_vm2  ;;  %v538_v12 = vor.u32 1.1754944e-38, %v537_v34 }
 0x1a4   :  { %v529_v0 = vmul.f32 %v881_v21, %v528_v61  ;;  %v575_v5 = vmul.f32 %v999_v10, %v525_v59  ;;  %v578_v10 = vmul.f32 %v997_v9, %v570_v56  ;;  %v400_v13 = vxor.u32 %v392_v16, %v384_v44 }
 0x1a5   :  { %v577_v51 = vmul.f32 %v995_v8, %v555_v6  ;;  %vm450_vm10 = vcmp.ge.s32.totalorder %v833_v7, 3006477107  ;;  %vm536_vm11 = vcmp.eq.f32.partialorder %v535_v49, 8.507059e+37  ;;  %vm797_vm1 = vcmask 27648  }
 0x1a6   :  { %v530_v40 = vadd.f32 %v881_v21, %v529_v0  ;;  %v583_v11 = vsel %vm1289_vm4, %v575_v5, 0.0  ;;  %v408_v8 = vmul.u32 3266489909, %v400_v13  ;;  %v586_v9 = vsel %vm450_vm10, %v578_v10, 0.0 }
 0x1a7   :  { %843 = vmatmul.msk.f32.vlgmr.msrb.gmra.mxu0 %vm587_vm9, %v583_v11  ;;  %v585_v17 = vsel %vm1302_vm6, %v577_v51, 0.0 }
 0x1a8   :  { %v534_v15 = vsel %vm533_vm8, %v881_v21, %v530_v40  ;;  %847 = vmatmul.msk.f32.vlgmr.msrb.gmra.mxu2 %vm587_vm9, %v585_v17  ;;  %v416_v28 = vshrl.u32 %v408_v8, 16 }
 0x1a9   :  { %v539_v23 = vsel %vm536_vm11, %v538_v12, %v534_v15 }
 0x1aa   :  { %v540_v27 = vmul.f32 1.25, %v539_v23  ;;  %849 = vmatmul.msk.f32.vlgmr.msrb.gmra.mxu3 %vm587_vm9, %v586_v9  ;;  %v424_v26 = vxor.u32 %v416_v28, %v408_v8 }
 0x1ac   :  { %v576_v29 = vmul.f32 %v1007_v14, %v540_v27  ;;  %v831_v31 = vxor.u32 2147483648, %v424_v26 }
 0x1ae   :  { %vm444_vm14 = vcmp.ge.s32.totalorder %v831_v31, 3006477107 }
 0x1af   :  { %v584_v25 = vsel %vm444_vm14, %v576_v29, 0.0 }
 0x1b0   :  { %845 = vmatmul.msk.f32.vlgmr.msrb.gmra.mxu1 %vm587_vm9, %v584_v25 }
 0x20d   :  { %v612_v44 = vpop.f32.mrf.mxu0 }
 0x20e   :  { %798 = vst.msk [vmem:[%s1358_s4] sm:$0xf] %vm797_vm1, %v612_v44 }
 0x21c   :  { %v638_v33 = vpop.f32.mrf.mxu1 }
 0x21d   :  { %799 = vst.msk [vmem:[%s1358_s4 + $0x4] sm:$0xf] %vm797_vm1, %v638_v33 }
 0x21f   :  { %v664_v52 = vpop.f32.mrf.mxu2 }
 0x220   :  { %800 = vst.msk [vmem:[%s1358_s4 + $0x8] sm:$0xf] %vm797_vm1, %v664_v52 }
 0x224   :  { %v716_v14 = vpop.f32.mrf.mxu0 }
 0x225   :  { %802 = vst.msk [vmem:[%s1358_s4 + $0x10] sm:$0xf] %vm797_vm1, %v716_v14  ;;  %v690_v37 = vpop.f32.mrf.mxu3 }
 0x226   :  { %801 = vst.msk [vmem:[%s1358_s4 + $0xc] sm:$0xf] %vm797_vm1, %v690_v37 }
 0x22b   :  { %v768_v39 = vpop.f32.mrf.mxu2 }
 0x22c   :  { %804 = vst.msk [vmem:[%s1358_s4 + $0x18] sm:$0xf] %vm797_vm1, %v768_v39 }
 0x22d   :  { %v794_v18 = vpop.f32.mrf.mxu3  ;;  %v742_v41 = vpop.f32.mrf.mxu1 }
 0x22e   :  { %805 = vst.msk [vmem:[%s1358_s4 + $0x1c] sm:$0xf] %vm797_vm1, %v794_v18 }
 0x22f   :  { %803 = vst.msk [vmem:[%s1358_s4 + $0x14] sm:$0xf] %vm797_vm1, %v742_v41 }

</bundles_post_ra>
